<compile_context>
chip_gen: v6e
topology: v6e:2x2x1
jax: 0.10.0
libtpu: 0.0.40
codegen_flags: <defaults>
</compile_context>

<pallas_src>
import math

import jax
import jax.numpy as jnp
from jax.experimental import pallas as pl
from jax.experimental.pallas import tpu as pltpu

LANES = 128
SUBLANES = 8

# Deterministic parameters straight from the module's __init__.
_CENTERS = ((3.0, 4.0), (6.0, 7.0), (8.0, 4.0))
_LOG_WEIGHTS = (math.log(1.0), math.log(0.5), math.log(1.05))
_INV_SCALES = (1.0, 1.0, 1.0)


def _round_up(a, b):
    return ((a + b - 1) // b) * b


def obs_model_kernel(x0_ref, x1_ref, o_ref):
    # x0_ref, x1_ref: VMEM (blk, 128) input coordinates (lane-dense over batch)
    # o_ref:          VMEM (blk, 128) f32 log-prob output
    x0 = x0_ref[...].astype(jnp.float32)
    x1 = x1_ref[...].astype(jnp.float32)

    terms = []
    for (c0, c1), lw, inv_s in zip(_CENTERS, _LOG_WEIGHTS, _INV_SCALES):
        dist = jnp.abs(x0 - c0) + jnp.abs(x1 - c1)          # L1 distance (VPU)
        if inv_s != 1.0:
            dist = dist * inv_s
        terms.append(lw - dist)

    # Numerically-stable logsumexp over the 3 components: 3 exps + 1 log / pt.
    m = terms[0]
    for t in terms[1:]:
        m = jnp.maximum(m, t)
    s = jnp.exp(terms[0] - m)
    for t in terms[1:]:
        s = s + jnp.exp(t - m)
    o_ref[...] = m + jnp.log(s)


def observation_model(x, *, block_rows=512):
    """x: (B, 2) float32/bfloat16 -> (B,) float32 log-prob."""
    B, d = x.shape
    assert d == 2

    if x.dtype not in (jnp.float32, jnp.bfloat16):
        x = x.astype(jnp.float32)

    # Lane-dense slabs: batch -> (rows, 128); pad rows to a multiple of the block.
    rows = pl.cdiv(B, LANES)
    blk = min(_round_up(block_rows, SUBLANES), _round_up(rows, SUBLANES))
    rows_padded = _round_up(rows, blk)
    b_padded = rows_padded * LANES

    pad = b_padded - B
    x0 = jnp.pad(x[:, 0], (0, pad)).reshape(rows_padded, LANES)
    x1 = jnp.pad(x[:, 1], (0, pad)).reshape(rows_padded, LANES)

    grid = (rows_padded // blk,)
    out = pl.pallas_call(
        obs_model_kernel,
        out_shape=jax.ShapeDtypeStruct((rows_padded, LANES), jnp.float32),
        grid_spec=pltpu.PrefetchScalarGridSpec(
            num_scalar_prefetch=0,
            grid=grid,
            in_specs=[
                pl.BlockSpec((blk, LANES), lambda i: (i, 0)),
                pl.BlockSpec((blk, LANES), lambda i: (i, 0)),
            ],
            out_specs=pl.BlockSpec((blk, LANES), lambda i: (i, 0)),
        ),
        compiler_params=pltpu.CompilerParams(
            dimension_semantics=("parallel",),
        ),
    )(x0, x1)
    return out.reshape(-1)[:B]


def observation_model_ref(x):
    """Pure-JAX reference mirroring the PyTorch forward."""
    x = x.astype(jnp.float32)
    centers = jnp.array(_CENTERS, dtype=jnp.float32)
    log_weights = jnp.array(_LOG_WEIGHTS, dtype=jnp.float32)
    inv_scales = jnp.array(_INV_SCALES, dtype=jnp.float32)
    dist = jnp.sum(jnp.abs(x[:, None, :] - centers[None, :, :]), axis=-1)  # (B, 3)
    terms = log_weights[None, :] - dist * inv_scales[None, :]
    return jax.scipy.special.logsumexp(terms, axis=1)


if __name__ == "__main__":
    key = jax.random.PRNGKey(0)

    # Small shape consistent with the module (batch of 2-D points).
    B = 8
    x = jax.random.normal(key, (B, 2), dtype=jnp.float32) * 3.0 + 5.0
    out = jax.block_until_ready(observation_model(x))
    ref = observation_model_ref(x)
    assert out.shape == (B,)
    assert jnp.allclose(out, ref, atol=1e-5, rtol=1e-5), (out, ref)

    # Second check exercising a multi-step grid and padded final block.
    B2 = 3000
    x2 = jax.random.normal(jax.random.PRNGKey(1), (B2, 2), dtype=jnp.float32) * 4.0 + 5.0
    out2 = jax.block_until_ready(observation_model(x2, block_rows=8))
    ref2 = observation_model_ref(x2)
    assert out2.shape == (B2,)
    assert jnp.allclose(out2, ref2, atol=1e-5, rtol=1e-5)

    print("KERNEL_OK")
</pallas_src>

<mosaic_0001>
module attributes {stable_mosaic.version = 11 : i64} {
  func.func @obs_model_kernel(%arg0: i32, %arg1: memref<8x128xf32, #tpu.memory_space<vmem>>, %arg2: memref<8x128xf32, #tpu.memory_space<vmem>>, %arg3: memref<8x128xf32, #tpu.memory_space<vmem>>) attributes {dimension_semantics = [#tpu.dimension_semantics<parallel>], iteration_bounds = array<i64: 1>, scalar_prefetch = 0 : i64, scratch_operands = 0 : i64, tpu.core_type = #tpu.core_type<tc>, window_params = [{transform_indices = @transform_0, window_bounds = array<i64: 8, 128>}, {transform_indices = @transform_1, window_bounds = array<i64: 8, 128>}, {transform_indices = @transform_2, window_bounds = array<i64: 8, 128>}]} {
    %c0 = arith.constant 0 : index
    %c0_0 = arith.constant 0 : index
    %0 = vector.load %arg1[%c0, %c0_0] : memref<8x128xf32, #tpu.memory_space<vmem>>, vector<8x128xf32>
    %c0_1 = arith.constant 0 : index
    %c0_2 = arith.constant 0 : index
    %1 = vector.load %arg2[%c0_1, %c0_2] : memref<8x128xf32, #tpu.memory_space<vmem>>, vector<8x128xf32>
    %cst = arith.constant 3.000000e+00 : f32
    %2 = vector.broadcast %cst : f32 to vector<8x128xf32>
    %3 = arith.subf %0, %2 : vector<8x128xf32>
    %4 = math.absf %3 : vector<8x128xf32>
    %cst_3 = arith.constant 4.000000e+00 : f32
    %5 = vector.broadcast %cst_3 : f32 to vector<8x128xf32>
    %6 = arith.subf %1, %5 : vector<8x128xf32>
    %7 = math.absf %6 : vector<8x128xf32>
    %8 = arith.addf %4, %7 : vector<8x128xf32>
    %cst_4 = arith.constant 0.000000e+00 : f32
    %9 = vector.broadcast %cst_4 : f32 to vector<8x128xf32>
    %10 = arith.subf %9, %8 : vector<8x128xf32>
    %cst_5 = arith.constant 6.000000e+00 : f32
    %11 = vector.broadcast %cst_5 : f32 to vector<8x128xf32>
    %12 = arith.subf %0, %11 : vector<8x128xf32>
    %13 = math.absf %12 : vector<8x128xf32>
    %cst_6 = arith.constant 7.000000e+00 : f32
    %14 = vector.broadcast %cst_6 : f32 to vector<8x128xf32>
    %15 = arith.subf %1, %14 : vector<8x128xf32>
    %16 = math.absf %15 : vector<8x128xf32>
    %17 = arith.addf %13, %16 : vector<8x128xf32>
    %cst_7 = arith.constant -0.693147182 : f32
    %18 = vector.broadcast %cst_7 : f32 to vector<8x128xf32>
    %19 = arith.subf %18, %17 : vector<8x128xf32>
    %cst_8 = arith.constant 8.000000e+00 : f32
    %20 = vector.broadcast %cst_8 : f32 to vector<8x128xf32>
    %21 = arith.subf %0, %20 : vector<8x128xf32>
    %22 = math.absf %21 : vector<8x128xf32>
    %cst_9 = arith.constant 4.000000e+00 : f32
    %23 = vector.broadcast %cst_9 : f32 to vector<8x128xf32>
    %24 = arith.subf %1, %23 : vector<8x128xf32>
    %25 = math.absf %24 : vector<8x128xf32>
    %26 = arith.addf %22, %25 : vector<8x128xf32>
    %cst_10 = arith.constant 0.0487901643 : f32
    %27 = vector.broadcast %cst_10 : f32 to vector<8x128xf32>
    %28 = arith.subf %27, %26 : vector<8x128xf32>
    %29 = arith.maximumf %10, %19 : vector<8x128xf32>
    %30 = arith.maximumf %29, %28 : vector<8x128xf32>
    %31 = arith.subf %10, %30 : vector<8x128xf32>
    %32 = math.exp %31 : vector<8x128xf32>
    %33 = arith.subf %19, %30 : vector<8x128xf32>
    %34 = math.exp %33 : vector<8x128xf32>
    %35 = arith.addf %32, %34 : vector<8x128xf32>
    %36 = arith.subf %28, %30 : vector<8x128xf32>
    %37 = math.exp %36 : vector<8x128xf32>
    %38 = arith.addf %35, %37 : vector<8x128xf32>
    %39 = math.log %38 : vector<8x128xf32>
    %40 = arith.addf %30, %39 : vector<8x128xf32>
    %c0_11 = arith.constant 0 : index
    %c0_12 = arith.constant 0 : index
    %41 = vector.load %arg3[%c0_11, %c0_12] : memref<8x128xf32, #tpu.memory_space<vmem>>, vector<8x128xf32>
    tpu.vector_store %arg3[%c0_11, %c0_12], %40 {strides = array<i32>} : memref<8x128xf32, #tpu.memory_space<vmem>>, vector<8x128xf32>,
    return
  }
  func.func @transform_0(%arg0: i32) -> (i32, i32) {
    %c0_i32 = arith.constant 0 : i32
    %c0_i32_0 = arith.constant 0 : i32
    return %arg0, %c0_i32 : i32, i32
  }
  func.func @transform_1(%arg0: i32) -> (i32, i32) {
    %c0_i32 = arith.constant 0 : i32
    %c0_i32_0 = arith.constant 0 : i32
    return %arg0, %c0_i32 : i32, i32
  }
  func.func @transform_2(%arg0: i32) -> (i32, i32) {
    %c0_i32 = arith.constant 0 : i32
    %c0_i32_0 = arith.constant 0 : i32
    return %arg0, %c0_i32 : i32, i32
  }
}

</mosaic_0001>

<bundles_post_ra>
// kernel: tpu_custom_call.1
= control target key start
LH: loop header
LB: loop body
LE: loop exit
PB: predicated region body
PF: predicated region fallthrough
CT: control target
= control target key end

     0   :  { %7 = vsyncpa [#allocation3], 0  ;;  %s196_s0 = inlined_call_operand.hbm [shape: f32[8,128], index: 0, kind: input, shape index: {}]   ;;  %s197_s1 = inlined_call_operand.hbm [shape: f32[8,128], index: 1, kind: input, shape index: {}]   ;;  %s198_s2 = inlined_call_operand.hbm [shape: f32[8,128], index: 2, kind: output, shape index: {}]  }
   0x1   :  { %8 = vsyncpa [#allocation6], 0 }
   0x2   :  { %9 = vsyncpa [#allocation4], 0  ;;  %s169_s9 = smov [#allocation2]   ;;  %s170_s11 = smov [#allocation5]  }
   0x3   :  { %s16_s10 = sshll.u32 %s169_s9, 4  ;;  %s26_s12 = sshll.u32 %s170_s11, 4  ;;  %s17_s10 = int_to_ptr.vmem [resolvable:$true] %s16_s10  ;;  %s27_s12 = int_to_ptr.vmem [resolvable:$true] %s26_s12 }
   0x4   :  { %s111_s13 = scalar_lea.vmem %s17_s10, 128  ;;  %p116_p1 = scmp.lt.s32.totalorder %s17_s10, %s17_s10 }
   0x5   :  { %p112_p0 = scmp.ne.s32.totalorder %s17_s10, %s111_s13  ;;  %p117_p2 = scmp.lt.s32.totalorder %s111_s13, %s111_s13 }
   0x7   :  { %p118_p3 = por %p117_p2, %p116_p1 }
   0x9   :  { %p119_p4 = pnand %p118_p3, %p112_p0 }
   0xb   :  { %122 = shalt.err (!%p119_p4)
}
   0xc   :  { %19 = dma.hbm_to_vmem [thread:$0]  %s196_s0, 128, %s17_s10, [#allocation3]  }
   0xd   :  { %s131_s16 = scalar_lea.vmem %s27_s12, 128  ;;  %p136_p6 = scmp.lt.s32.totalorder %s27_s12, %s27_s12 }
   0xe   :  { %p132_p5 = scmp.ne.s32.totalorder %s27_s12, %s131_s16  ;;  %p137_p7 = scmp.lt.s32.totalorder %s131_s16, %s131_s16 }
  0x10   :  { %p138_p8 = por %p137_p7, %p136_p6 }
  0x12   :  { %p139_p9 = pnand %p138_p8, %p132_p5 }
  0x14   :  { %142 = shalt.err (!%p139_p9)
}
  0x15   :  { %29 = dma.hbm_to_vmem [thread:$0]  %s197_s1, 128, %s27_s12, [#allocation6]  }
  0x16   :  { %163 = dma.done.wait [#allocation3], 128  }
  0x17   :  { %164 = vsyncadd [#allocation3], 4294967168 }
  0x18   :  { %165 = dma.done.wait [#allocation6], 128  }
  0x19   :  { %166 = vsyncadd [#allocation6], 4294967168  ;;  %v36_v0 = vld [vmem:[#allocation2] sm:$0xff]  ;;  %v37_v1 = vld [vmem:[#allocation5] sm:$0xff]  ;;  %s171_s0 = smov [#allocation7]  }
  0x1a   :  { %v87_v2 = vadd.f32 -3.0, %v36_v0  ;;  %v88_v3 = vadd.f32 -4.0, %v37_v1  ;;  %v89_v4 = vadd.f32 -6.0, %v36_v0  ;;  %v90_v5 = vadd.f32 -7.0, %v37_v1  ;;  %s77_s1 = sshll.u32 %s171_s0, 4  ;;  %s78_s1 = int_to_ptr.vmem [resolvable:$true] %s77_s1 }
  0x1b   :  { %v91_v6 = vadd.f32 -8.0, %v36_v0  ;;  %s143_s19 = scalar_lea.vmem %s78_s1, 128  ;;  %p148_p11 = scmp.lt.s32.totalorder %s78_s1, %s78_s1 }
  0x1c   :  { %v39_v7 = vand.u32 2147483647, %v87_v2  ;;  %v41_v8 = vand.u32 2147483647, %v88_v3  ;;  %v45_v9 = vand.u32 2147483647, %v89_v4  ;;  %p144_p10 = scmp.ne.s32.totalorder %s78_s1, %s143_s19  ;;  %p149_p12 = scmp.lt.s32.totalorder %s143_s19, %s143_s19 }
  0x1d   :  { %v47_v10 = vand.u32 2147483647, %v90_v5  ;;  %v51_v11 = vand.u32 2147483647, %v91_v6 }
  0x1e   :  { %v42_v12 = vadd.f32 %v41_v8, %v39_v7  ;;  %p150_p13 = por %p149_p12, %p148_p11 }
  0x1f   :  { %v48_v13 = vadd.f32 %v47_v10, %v45_v9  ;;  %v52_v14 = vadd.f32 %v51_v11, %v41_v8 }
  0x20   :  { %v43_v15 = vsub.f32 0.0, %v42_v12  ;;  %p151_p0 = pnand %p150_p13, %p144_p10 }
  0x21   :  { %v49_v16 = vsub.f32 -0.6931472, %v48_v13  ;;  %v53_v17 = vsub.f32 0.048790164, %v52_v14 }
  0x23   :  { %v54_v18 = vmax.f32 %v43_v15, %v49_v16 }
  0x25   :  { %v55_v19 = vmax.f32 %v54_v18, %v53_v17 }
  0x27   :  { %v56_v20 = vsub.f32 %v43_v15, %v55_v19  ;;  %v59_v21 = vsub.f32 %v49_v16, %v55_v19  ;;  %v63_v22 = vsub.f32 %v53_v17, %v55_v19 }
  0x29   :  { %v57_v23 = vmul.f32 1.442695, %v56_v20  ;;  %v60_v24 = vmul.f32 1.442695, %v59_v21  ;;  %v64_v25 = vmul.f32 1.442695, %v63_v22 }
  0x2b   :  { %95 = vpow2.f32 %v57_v23 }
  0x2c   :  { %97 = vpow2.f32 %v60_v24 }
  0x2d   :  { %99 = vpow2.f32 %v64_v25 }
  0x38   :  { %v96_v26 = vpop.eup %95 }
  0x39   :  { %v98_v27 = vpop.eup %97 }
  0x3a   :  { %v100_v28 = vpop.eup %99  ;;  %v62_v29 = vadd.f32 %v98_v27, %v96_v26 }
  0x3c   :  { %v66_v30 = vadd.f32 %v100_v28, %v62_v29 }
  0x3e   :  { %101 = vlog2.f32 %v66_v30 }
  0x4b   :  { %v102_v31 = vpop.eup %101 }
  0x4c   :  { %v68_v32 = vmul.f32 0.6931472, %v102_v31 }
  0x4e   :  { %v69_v33 = vadd.f32 %v68_v32, %v55_v19 }
  0x50   :  { %70 = vst [vmem:[#allocation7] sm:$0xff] %v69_v33 }
  0x51   :  { %154 = shalt.err (!%p151_p0)
}
  0x52   :  { %80 = dma.vmem_to_hbm [thread:$0]  %s78_s1, 128, %s198_s2, [#allocation4]  }
  0x53   :  { %167 = dma.done.wait [#allocation4], 128  }
  0x54   :  { %168 = vsyncadd [#allocation4], 4294967168 }
  0x55   :  { %84 = vsyncpa [#allocation3], 1 }
  0x56   :  { %85 = vsyncpa [#allocation6], 1 }
  0x57   :  { %86 = vsyncpa [#allocation4], 1 }

</bundles_post_ra>
